<compile_context>
chip_gen: v7x
topology: tpu7x:2x2x1
jax: 0.10.0
libtpu: 0.0.40
codegen_flags: <defaults>
</compile_context>

<pallas_src>
import jax
import jax.numpy as jnp
from jax.experimental import pallas as pl
from jax.experimental.pallas import tpu as pltpu

INPUT_DIM = 32
HIDDEN_DIM = 64
OUTPUT_DIM = 4
TB_MAX = 8192          # batch-tile rows (multiple of 8)


def _round_up(n, m):
    return ((n + m - 1) // m) * m


def _mlp_softmax_kernel(x_ref, w1_ref, b1_ref, w2_ref, b2_ref, w3_ref, b3_ref, o_ref):
    # f32 tile in; cast to bf16 on the VPU (hidden under the tile DMA).
    x = x_ref[...].astype(jnp.bfloat16)                                # (TB, 32)

    # Linear 1 + ReLU (f32 accumulate on the MXU, bf16 re-stream).
    h1 = jnp.dot(x, w1_ref[...], preferred_element_type=jnp.float32) + b1_ref[...]
    h1 = jnp.maximum(h1, 0.0).astype(jnp.bfloat16)                     # (TB, 64)

    # Linear 2 + ReLU.
    h2 = jnp.dot(h1, w2_ref[...], preferred_element_type=jnp.float32) + b2_ref[...]
    h2 = jnp.maximum(h2, 0.0).astype(jnp.bfloat16)                     # (TB, 64)

    # Linear 3 (narrow, OUTPUT_DIM lanes) + numerically-stable softmax in f32.
    logits = jnp.dot(h2, w3_ref[...], preferred_element_type=jnp.float32) + b3_ref[...]
    m = jnp.max(logits, axis=-1, keepdims=True)
    e = jnp.exp(logits - m)
    denom = jnp.sum(e, axis=-1, keepdims=True)
    o_ref[...] = (e / denom).astype(o_ref.dtype)                       # (TB, 4)


def init_params(key, input_dim, hidden_dim, output_dim):
    """PyTorch-Linear-style init (U[-1/sqrt(fan_in), 1/sqrt(fan_in)]).

    Weights stored transposed relative to torch: (in_features, out_features).
    """
    ks = jax.random.split(key, 6)

    def lin(kw, kb, fan_in, fan_out):
        bound = 1.0 / jnp.sqrt(fan_in)
        w = jax.random.uniform(kw, (fan_in, fan_out), jnp.float32, -bound, bound)
        b = jax.random.uniform(kb, (1, fan_out), jnp.float32, -bound, bound)
        return w, b

    w1, b1 = lin(ks[0], ks[1], input_dim, hidden_dim)
    w2, b2 = lin(ks[2], ks[3], hidden_dim, hidden_dim)
    w3, b3 = lin(ks[4], ks[5], hidden_dim, output_dim)
    return w1, b1, w2, b2, w3, b3


def policy_network_forward(x, params):
    w1, b1, w2, b2, w3, b3 = params

    # Glue: matches torch `x.reshape(-1, input_dim)`. Stays f32 (cast in-kernel).
    x2 = x.reshape(-1, INPUT_DIM)
    batch = x2.shape[0]

    # Weights streamed once as bf16 (VMEM-resident across the grid); biases f32.
    w1b = w1.astype(jnp.bfloat16)
    w2b = w2.astype(jnp.bfloat16)
    w3b = w3.astype(jnp.bfloat16)

    # Batch tile: multiple of 8, aims for >= 4 grid steps (v7x megacore),
    # capped at TB_MAX. No padding of x: grid = cdiv(batch, tb) and Pallas
    # clips the last partial block's stores.
    tb = min(TB_MAX, _round_up(pl.cdiv(batch, 4), 8))
    grid = (pl.cdiv(batch, tb),)

    resident = lambda shape: pl.BlockSpec(shape, lambda i: (0, 0))  # VMEM-resident

    out = pl.pallas_call(
        _mlp_softmax_kernel,
        out_shape=jax.ShapeDtypeStruct((batch, OUTPUT_DIM), jnp.float32),
        grid=grid,
        in_specs=[
            pl.BlockSpec((tb, INPUT_DIM), lambda i: (i, 0)),   # batch-tiled x (f32)
            resident(w1b.shape), resident(b1.shape),
            resident(w2b.shape), resident(b2.shape),
            resident(w3b.shape), resident(b3.shape),
        ],
        out_specs=pl.BlockSpec((tb, OUTPUT_DIM), lambda i: (i, 0)),
        compiler_params=pltpu.CompilerParams(
            dimension_semantics=("parallel",)),                # megacore sharding
    )(x2, w1b, b1, w2b, b2, w3b, b3)

    return out


def _reference_forward(x, params):
    w1, b1, w2, b2, w3, b3 = params
    x2 = x.reshape(-1, INPUT_DIM).astype(jnp.float32)
    h1 = jnp.maximum(x2 @ w1 + b1, 0.0)
    h2 = jnp.maximum(h1 @ w2 + b2, 0.0)
    logits = h2 @ w3 + b3
    return jax.nn.softmax(logits, axis=-1)


if __name__ == "__main__":
    key = jax.random.PRNGKey(0)
    k_params, k_x = jax.random.split(key)

    params = init_params(k_params, INPUT_DIM, HIDDEN_DIM, OUTPUT_DIM)

    # Small batched input; forward reshapes (2, 4, 32) -> (8, 32).
    x = jax.random.normal(k_x, (2, 4, INPUT_DIM), dtype=jnp.float32)

    out = policy_network_forward(x, params)
    out = jax.block_until_ready(out)

    ref = _reference_forward(x, params)
    assert out.shape == (8, OUTPUT_DIM)
    # Exact divide -> rows sum to 1 within f32 rounding; values match the f32
    # reference up to bf16 streaming error.
    assert jnp.allclose(jnp.sum(out, axis=-1), 1.0, atol=1e-4)
    assert jnp.allclose(out, ref, atol=3e-2, rtol=3e-2)

    print("KERNEL_OK")
</pallas_src>

<mosaic_0001>
module attributes {stable_mosaic.version = 11 : i64} {
  func.func @_mlp_softmax_kernel(%arg0: i32, %arg1: memref<8x32xf32, #tpu.memory_space<vmem>>, %arg2: memref<32x64xbf16, #tpu.memory_space<vmem>>, %arg3: memref<1x64xf32, #tpu.memory_space<vmem>>, %arg4: memref<64x64xbf16, #tpu.memory_space<vmem>>, %arg5: memref<1x64xf32, #tpu.memory_space<vmem>>, %arg6: memref<64x4xbf16, #tpu.memory_space<vmem>>, %arg7: memref<1x4xf32, #tpu.memory_space<vmem>>, %arg8: memref<8x4xf32, #tpu.memory_space<vmem>>) attributes {dimension_semantics = [#tpu.dimension_semantics<parallel>], iteration_bounds = array<i64: 1>, scalar_prefetch = 0 : i64, scratch_operands = 0 : i64, tpu.core_type = #tpu.core_type<tc>, window_params = [{transform_indices = @transform_0, window_bounds = array<i64: 8, 32>}, {pipeline_mode = #tpu.pipeline_mode<synchronous>, transform_indices = @transform_1, window_bounds = array<i64: 32, 64>}, {pipeline_mode = #tpu.pipeline_mode<synchronous>, transform_indices = @transform_2, window_bounds = array<i64: 1, 64>}, {pipeline_mode = #tpu.pipeline_mode<synchronous>, transform_indices = @transform_3, window_bounds = array<i64: 64, 64>}, {pipeline_mode = #tpu.pipeline_mode<synchronous>, transform_indices = @transform_4, window_bounds = array<i64: 1, 64>}, {pipeline_mode = #tpu.pipeline_mode<synchronous>, transform_indices = @transform_5, window_bounds = array<i64: 64, 4>}, {pipeline_mode = #tpu.pipeline_mode<synchronous>, transform_indices = @transform_6, window_bounds = array<i64: 1, 4>}, {transform_indices = @transform_7, window_bounds = array<i64: 8, 4>}]} {
    %c0 = arith.constant 0 : index
    %c0_0 = arith.constant 0 : index
    %0 = vector.load %arg1[%c0, %c0_0] : memref<8x32xf32, #tpu.memory_space<vmem>>, vector<8x32xf32>
    %1 = arith.truncf %0 : vector<8x32xf32> to vector<8x32xbf16>
    %c0_1 = arith.constant 0 : index
    %c0_2 = arith.constant 0 : index
    %2 = vector.load %arg2[%c0_1, %c0_2] : memref<32x64xbf16, #tpu.memory_space<vmem>>, vector<32x64xbf16>
    %cst = arith.constant dense<0.000000e+00> : vector<8x64xf32>
    %3 = tpu.matmul %1, %2, %cst {dimension_numbers = #tpu.dot_dimension_numbers<[1], [0], [0], [1], [0, 0, 1, 1], [], []>} : vector<8x32xbf16>, vector<32x64xbf16>, vector<8x64xf32> -> vector<8x64xf32>
    %c0_3 = arith.constant 0 : index
    %c0_4 = arith.constant 0 : index
    %4 = vector.load %arg3[%c0_3, %c0_4] : memref<1x64xf32, #tpu.memory_space<vmem>>, vector<1x64xf32>
    %5 = vector.broadcast %4 : vector<1x64xf32> to vector<8x64xf32>
    %6 = arith.addf %3, %5 : vector<8x64xf32>
    %cst_5 = arith.constant 0.000000e+00 : f32
    %7 = vector.broadcast %cst_5 : f32 to vector<8x64xf32>
    %8 = arith.maximumf %6, %7 : vector<8x64xf32>
    %9 = arith.truncf %8 : vector<8x64xf32> to vector<8x64xbf16>
    %c0_6 = arith.constant 0 : index
    %c0_7 = arith.constant 0 : index
    %10 = vector.load %arg4[%c0_6, %c0_7] : memref<64x64xbf16, #tpu.memory_space<vmem>>, vector<64x64xbf16>
    %cst_8 = arith.constant dense<0.000000e+00> : vector<8x64xf32>
    %11 = tpu.matmul %9, %10, %cst_8 {dimension_numbers = #tpu.dot_dimension_numbers<[1], [0], [0], [1], [0, 0, 1, 1], [], []>} : vector<8x64xbf16>, vector<64x64xbf16>, vector<8x64xf32> -> vector<8x64xf32>
    %c0_9 = arith.constant 0 : index
    %c0_10 = arith.constant 0 : index
    %12 = vector.load %arg5[%c0_9, %c0_10] : memref<1x64xf32, #tpu.memory_space<vmem>>, vector<1x64xf32>
    %13 = vector.broadcast %12 : vector<1x64xf32> to vector<8x64xf32>
    %14 = arith.addf %11, %13 : vector<8x64xf32>
    %cst_11 = arith.constant 0.000000e+00 : f32
    %15 = vector.broadcast %cst_11 : f32 to vector<8x64xf32>
    %16 = arith.maximumf %14, %15 : vector<8x64xf32>
    %17 = arith.truncf %16 : vector<8x64xf32> to vector<8x64xbf16>
    %c0_12 = arith.constant 0 : index
    %c0_13 = arith.constant 0 : index
    %18 = vector.load %arg6[%c0_12, %c0_13] : memref<64x4xbf16, #tpu.memory_space<vmem>>, vector<64x4xbf16>
    %cst_14 = arith.constant dense<0.000000e+00> : vector<8x4xf32>
    %19 = tpu.matmul %17, %18, %cst_14 {dimension_numbers = #tpu.dot_dimension_numbers<[1], [0], [0], [1], [0, 0, 1, 1], [], []>} : vector<8x64xbf16>, vector<64x4xbf16>, vector<8x4xf32> -> vector<8x4xf32>
    %c0_15 = arith.constant 0 : index
    %c0_16 = arith.constant 0 : index
    %20 = vector.load %arg7[%c0_15, %c0_16] : memref<1x4xf32, #tpu.memory_space<vmem>>, vector<1x4xf32>
    %21 = vector.broadcast %20 : vector<1x4xf32> to vector<8x4xf32>
    %22 = arith.addf %19, %21 : vector<8x4xf32>
    %cst_17 = arith.constant dense<0xFF800000> : vector<8xf32>
    %23 = vector.multi_reduction <maximumf>, %22, %cst_17 [1] : vector<8x4xf32> to vector<8xf32>
    %24 = vector.shape_cast %23 : vector<8xf32> to vector<8x1xf32>
    %25 = vector.broadcast %24 : vector<8x1xf32> to vector<8x4xf32>
    %26 = arith.subf %22, %25 : vector<8x4xf32>
    %27 = math.exp %26 : vector<8x4xf32>
    %cst_18 = arith.constant dense<0.000000e+00> : vector<8xf32>
    %28 = vector.multi_reduction <add>, %27, %cst_18 [1] : vector<8x4xf32> to vector<8xf32>
    %29 = vector.shape_cast %28 : vector<8xf32> to vector<8x1xf32>
    %30 = vector.broadcast %29 : vector<8x1xf32> to vector<8x4xf32>
    %31 = arith.divf %27, %30 : vector<8x4xf32>
    %c0_19 = arith.constant 0 : index
    %c0_20 = arith.constant 0 : index
    %32 = vector.load %arg8[%c0_19, %c0_20] : memref<8x4xf32, #tpu.memory_space<vmem>>, vector<8x4xf32>
    tpu.vector_store %arg8[%c0_19, %c0_20], %31 {strides = array<i32>} : memref<8x4xf32, #tpu.memory_space<vmem>>, vector<8x4xf32>,
    return
  }
  func.func @transform_0(%arg0: i32) -> (i32, i32) {
    %c0_i32 = arith.constant 0 : i32
    %c0_i32_0 = arith.constant 0 : i32
    return %arg0, %c0_i32 : i32, i32
  }
  func.func @transform_1(%arg0: i32) -> (i32, i32) {
    %c0_i32 = arith.constant 0 : i32
    %c0_i32_0 = arith.constant 0 : i32
    %c0_i32_1 = arith.constant 0 : i32
    return %c0_i32, %c0_i32_0 : i32, i32
  }
  func.func @transform_2(%arg0: i32) -> (i32, i32) {
    %c0_i32 = arith.constant 0 : i32
    %c0_i32_0 = arith.constant 0 : i32
    %c0_i32_1 = arith.constant 0 : i32
    return %c0_i32, %c0_i32_0 : i32, i32
  }
  func.func @transform_3(%arg0: i32) -> (i32, i32) {
    %c0_i32 = arith.constant 0 : i32
    %c0_i32_0 = arith.constant 0 : i32
    %c0_i32_1 = arith.constant 0 : i32
    return %c0_i32, %c0_i32_0 : i32, i32
  }
  func.func @transform_4(%arg0: i32) -> (i32, i32) {
    %c0_i32 = arith.constant 0 : i32
    %c0_i32_0 = arith.constant 0 : i32
    %c0_i32_1 = arith.constant 0 : i32
    return %c0_i32, %c0_i32_0 : i32, i32
  }
  func.func @transform_5(%arg0: i32) -> (i32, i32) {
    %c0_i32 = arith.constant 0 : i32
    %c0_i32_0 = arith.constant 0 : i32
    %c0_i32_1 = arith.constant 0 : i32
    return %c0_i32, %c0_i32_0 : i32, i32
  }
  func.func @transform_6(%arg0: i32) -> (i32, i32) {
    %c0_i32 = arith.constant 0 : i32
    %c0_i32_0 = arith.constant 0 : i32
    %c0_i32_1 = arith.constant 0 : i32
    return %c0_i32, %c0_i32_0 : i32, i32
  }
  func.func @transform_7(%arg0: i32) -> (i32, i32) {
    %c0_i32 = arith.constant 0 : i32
    %c0_i32_0 = arith.constant 0 : i32
    return %arg0, %c0_i32 : i32, i32
  }
}

</mosaic_0001>

<bundles_post_ra>
// kernel: tpu_custom_call.1
= control target key start
LH: loop header
LB: loop body
LE: loop exit
PB: predicated region body
PF: predicated region fallthrough
CT: control target
= control target key end

     0   :  { %12 = vsyncpa [#allocation3], 0  ;;  %s401_s24 = smov [#allocation2]   ;;  %s505_s0 = inlined_call_operand.vmem [shape: f32[8,32], index: 0, kind: input, shape index: {}]   ;;  %s506_s1 = inlined_call_operand.hbm [shape: bf16[32,64], index: 1, kind: input, shape index: {}]   ;;  %s507_s2 = inlined_call_operand.vmem [shape: f32[1,64], index: 2, kind: input, shape index: {}]   ;;  %s508_s3 = inlined_call_operand.vmem [shape: bf16[64,64], index: 3, kind: input, shape index: {}]   ;;  %s509_s4 = inlined_call_operand.vmem [shape: f32[1,64], index: 4, kind: input, shape index: {}]   ;;  %s510_s5 = inlined_call_operand.vmem [shape: bf16[64,4], index: 5, kind: input, shape index: {}]   ;;  %s511_s6 = inlined_call_operand.vmem [shape: f32[1,4], index: 6, kind: input, shape index: {}]   ;;  %s512_s7 = inlined_call_operand.vmem [shape: f32[8,4], index: 7, kind: output, shape index: {}]  }
   0x1   :  { %s20_s25 = sshll.u32 %s401_s24, 4  ;;  %s377_s28 = scalar_lea.hbm %s506_s1, 256  ;;  %s21_s25 = int_to_ptr.vmem [resolvable:$true] %s20_s25 }
   0x2   :  { %p378_p0 = scmp.ne.s32.totalorder %s506_s1, %s377_s28  ;;  %p381_p1 = scmp.lt.u32.totalorder %s377_s28, %s506_s1 }
   0x4   :  { %p383_p2 = pnand %p381_p1, %p378_p0 }
   0x6   :  { %386 = shalt.err (!%p383_p2)
}
   0x7   :  { %s387_s10 = scalar_lea.vmem %s21_s25, 256  ;;  %p392_p4 = scmp.lt.s32.totalorder %s21_s25, %s21_s25 }
   0x8   :  { %p388_p3 = scmp.ne.s32.totalorder %s21_s25, %s387_s10  ;;  %p393_p5 = scmp.lt.s32.totalorder %s387_s10, %s387_s10 }
   0xa   :  { %p394_p6 = por %p393_p5, %p392_p4 }
   0xc   :  { %p395_p7 = pnand %p394_p6, %p388_p3 }
   0xe   :  { %398 = shalt.err (!%p395_p7)
}
   0xf   :  { %s402_s11 = smov 64   ;;  %s403_s12 = smov 4  }
  0x10   :  { %26 = dma.hbm_to_vmem [thread:$0]  %s506_s1, 256, %s21_s25, [#allocation3], %s402_s11, %s402_s11, %s403_s12  }
  0x11   :  { %399 = dma.done.wait [#allocation3], 256  }
  0x12   :  { %400 = vsyncadd [#allocation3], 4294967040  ;;  %v404_v0 = vmov 0.0   ;;  %vm405_vm0 = vmmov 0   ;;  %v363_v1 = vld [vmem:[#allocation2] sm:$0xff]   ;;  %v364_v2 = vld [vmem:[#allocation2 + $0x8] sm:$0xff]  }
  0x13   :  { %326 = vmatprep.subr.bf16.mxu0 %v404_v0  ;;  %330 = vmatprep.mubr.msk.bf16.mxu0 %vm405_vm0, %v404_v0  ;;  %v41_v3 = vld [vmem:[%s505_s0] sm:$0xff]  ;;  %vm66_vm1 = vcmask 261120   ;;  %v366_v5 = vld [vmem:[%s508_s3 + $0x8] sm:$0xff]   ;;  %v367_v7 = vld [vmem:[%s508_s3 + $0x10] sm:$0xff]   ;;  %vm151_vm2 = vcmask 523264   ;;  %vm279_vm3 = vcmask 31744  }
  0x14   :  { %334 = vmatprep.subr.bf16.mxu1 %v404_v0  ;;  %342 = vmatprep.mubr.msk.bf16.mxu1 %vm405_vm0, %v404_v0  ;;  %v365_v4 = vld [vmem:[%s508_s3] sm:$0xff]   ;;  %v42_v6 = vpack.c.bf16 %v41_v3, %v41_v3  ;;  %v368_v8 = vld [vmem:[%s508_s3 + $0x18] sm:$0xff]   ;;  %v370_v10 = vld [vmem:[%s510_s5 + $0x8] sm:$0xff]  }
  0x15   :  { %327 = vmatpush3.bf16.msra.mxu0 %v363_v1  ;;  %335 = vmatpush3.bf16.msra.mxu1 %v365_v4  ;;  %v369_v9 = vld [vmem:[%s510_s5] sm:$0xff]   ;;  %v371_v19 = vld [vmem:[%s510_s5 + $0x10] sm:$0xff]   ;;  %v372_v20 = vld [vmem:[%s510_s5 + $0x18] sm:$0xff]  }
  0x16   :  { %328 = vmatprep.subr.bf16.mxu0 %v404_v0  ;;  %336 = vmatprep.subr.bf16.mxu1 %v404_v0  ;;  %v297_v11 = vld [vmem:[%s507_s2] ss:$0 sm:$0xff] }
  0x17   :  { %v301_v21 = vld [vmem:[%s509_s4] ss:$0 sm:$0xff] }
  0x18   :  { %v307_v29 = vld [vmem:[%s511_s6] ss:$0 sm:$0xff] }
  0x19   :  { %329 = vmatpush3.bf16.msra.mxu0 %v364_v2  ;;  %337 = vmatpush3.bf16.msra.mxu1 %v366_v5 }
  0x1a   :  { %346 = vmatprep.subr.bf16.mxu0 %v404_v0  ;;  %338 = vmatprep.subr.bf16.mxu1 %v404_v0 }
  0x1c   :  { %331 = vmatmul.mubr.msk.bf16.vlgmr.msra.gmra.mrb[0].mxu0 %vm66_vm1, %v42_v6 }
  0x1d   :  { %354 = vmatprep.mubr.msk.bf16.mxu0 %vm405_vm0, %v404_v0  ;;  %339 = vmatpush3.bf16.msra.mxu1 %v367_v7 }
  0x1e   :  { %340 = vmatprep.subr.bf16.mxu1 %v404_v0  ;;  %347 = vmatpush3.bf16.msra.mxu0 %v369_v9 }
  0x1f   :  { %348 = vmatprep.subr.bf16.mxu0 %v404_v0 }
  0x21   :  { %341 = vmatpush3.bf16.msra.mxu1 %v368_v8 }
  0x22   :  { %349 = vmatpush3.bf16.msra.mxu0 %v370_v10 }
  0x23   :  { %350 = vmatprep.subr.bf16.mxu0 %v404_v0 }
  0x26   :  { %351 = vmatpush3.bf16.msra.mxu0 %v371_v19 }
  0x27   :  { %352 = vmatprep.subr.bf16.mxu0 %v404_v0 }
  0x2a   :  { %353 = vmatpush3.bf16.msra.mxu0 %v372_v20 }
  0xef   :  { %v104_v12 = vpop.f32.mrb[0].mxu0 }
  0xf0   :  { %v105_v13 = vadd.f32 %v297_v11, %v104_v12  ;;  %v332_v14 = vpop.f32.mrb[1].mxu0 }
  0xf1   :  { %v107_v15 = vpop.f32.mrb[2].mxu0 }
  0xf2   :  { %v110_v16 = vmax.f32 %v105_v13, 0.0  ;;  %v333_v17 = vpop.f32.mrb[3].mxu0 }
  0xf4   :  { %v111_v18 = vpack.c.bf16 %v110_v16, %v110_v16 }
  0xf6   :  { %343 = vmatmul.mubr.msk.bf16.vlgmr.msra.gmra.mrb[0].mxu1 %vm151_vm2, %v111_v18 }
 0x1c9   :  { %v189_v22 = vpop.f32.mrb[0].mxu1 }
 0x1ca   :  { %v190_v23 = vadd.f32 %v301_v21, %v189_v22  ;;  %v344_v24 = vpop.f32.mrb[1].mxu1 }
 0x1cb   :  { %v192_v25 = vpop.f32.mrb[2].mxu1 }
 0x1cc   :  { %v195_v26 = vmax.f32 %v190_v23, 0.0  ;;  %v345_v27 = vpop.f32.mrb[3].mxu1 }
 0x1ce   :  { %v196_v28 = vpack.c.bf16 %v195_v26, %v195_v26 }
 0x1d0   :  { %355 = vmatmul.mubr.msk.bf16.vlgmr.msra.gmra.mrb[4].mxu0 %vm151_vm2, %v196_v28 }
 0x2a3   :  { %v273_v30 = vpop.f32.mrb[4].mxu0 }
 0x2a4   :  { %v274_v31 = vadd.f32 %v307_v29, %v273_v30  ;;  %v356_v32 = vpop.f32.mrb[5].mxu0 }
 0x2a5   :  { %v276_v33 = vpop.f32.mrb[6].mxu0 }
 0x2a6   :  { %v357_v34 = vpop.f32.mrb[7].mxu0  ;;  %v280_v35 = vsel %vm279_vm3, %v274_v31, -inf }
 0x2a7   :  { %281 = vmax.xlane.f32.xlu0 %v280_v35 }
 0x334   :  { %v282_v36 = vpop.xlane.xlu0 %281 }
 0x335   :  { %v283_v37 = vsub.f32 %v274_v31, %v282_v36 }
 0x337   :  { %v284_v38 = vmul.f32 1.442695, %v283_v37 }
 0x339   :  { %373 = vpow2.f32 %v284_v38 }
 0x343   :  { %v374_v39 = vpop.eup %373 }
 0x344   :  { %v286_v40 = vsel %vm279_vm3, %v374_v39, 0.0 }
 0x345   :  { %287 = vadd.xlane.f32.xlu0 %v286_v40 }
 0x3d2   :  { %v288_v41 = vpop.xlane.xlu0 %287 }
 0x3d3   :  { %375 = vrcp.f32 %v288_v41 }
 0x3dd   :  { %v376_v42 = vpop.eup %375 }
 0x3de   :  { %v290_v43 = vmul.f32 %v376_v42, %v374_v39 }
 0x3e0   :  { %291 = vst.msk [vmem:[%s512_s7] sm:$0xff] %vm279_vm3, %v290_v43 }
 0x3e1   :  { %296 = vsyncpa [#allocation3], 1 }

</bundles_post_ra>
